<compile_context>
chip_gen: v5e
topology: v5e:2x2
jax: 0.10.0
libtpu: 0.0.40
codegen_flags: <defaults>
</compile_context>

<pallas_src>
import functools

import jax
import jax.numpy as jnp
from jax.experimental import pallas as pl
from jax.experimental.pallas import tpu as pltpu

WIN = 9          # default window from the PyTorch module (win=None -> [9, 9])
EPS = 1e-5       # matches the 1e-05 in the PyTorch forward
VMEM_BUDGET = 40 * 1024 * 1024   # conservative per-step budget (fits v7x 64 MiB physical)


def _vmem_estimate(H, Wp):
    """Rough per-grid-step VMEM footprint in bytes."""
    per_map = H * Wp * 4
    inputs = 2 * 2 * per_map        # I and J blocks, double-buffered by the pipeline
    temps = 18 * per_map            # row-stacked maps (5+5) + ~8 live (H, Wp) f32 temps
    bands = (H * H + Wp * Wp) * 4   # in-kernel band matrices
    return inputs + temps + bands


def _choose_bblk(bs, H, W):
    """How many images to pack along the lane axis per grid step."""
    candidates = [b for b in range(1, bs + 1)
                  if bs % b == 0 and _vmem_estimate(H, b * W) <= VMEM_BUDGET]
    # Prefer lane-dense packing (fill up to ~2 lane tiles).
    dense = [b for b in candidates if b * W <= 256] or candidates[:1]
    best = max(dense)
    # v7x megacore: keep >= 2 grid steps if we can do so without dropping below 128 lanes.
    if bs // best < 2:
        two_core = [b for b in dense if bs // b >= 2 and b * W >= 128]
        if two_core:
            best = max(two_core)
    return best


def _ncc_kernel(i_ref, j_ref, out_ref, *, H, W, Bblk, half, win_size):
    """Grid = (bs // Bblk,). One lane-packed slab of Bblk images per grid step.

    i_ref, j_ref : (1, H, Bblk*W) blocks (I = y_true, J = y_pred), images packed on lanes
    out_ref      : (1, 1, 1) per-block sum of cc
    """
    Wp = Bblk * W
    I = i_ref[0]          # (H, Wp)
    J = j_ref[0]          # (H, Wp)

    # ---- band matrices generated in-kernel (broadcasted_iota, no HBM traffic) ----
    def band(n):
        r = jax.lax.broadcasted_iota(jnp.int32, (n, n), 0)
        c = jax.lax.broadcasted_iota(jnp.int32, (n, n), 1)
        d = r - c
        return jnp.logical_and(d <= half, d >= -half), r, c

    band_h, _, _ = band(H)
    A = band_h.astype(jnp.float32)                      # (H, H): vertical 9-tap sum (zero pad)

    band_w, rw, cw = band(Wp)
    # Block-band: the 9-tap window must not mix lane-packed neighbour images.
    for k in range(1, Bblk):
        edge = k * W
        same_side = jnp.logical_not(jnp.logical_xor(rw < edge, cw < edge))
        band_w = jnp.logical_and(band_w, same_side)
    Bp = band_w.astype(jnp.float32)                     # (Wp, Wp): horizontal 9-tap sum

    # ---- fused separable box filters: 6 MXU matmuls instead of 10 ----
    # Row-stack the five maps, do the horizontal stage once for all of them,
    # then the vertical stage per map (sublane-aligned static slices).
    Xr = jnp.concatenate([I, J, I * I, J * J, I * J], axis=0)        # (5H, Wp)
    Yr = jnp.dot(Xr, Bp, preferred_element_type=jnp.float32,
                 precision=jax.lax.Precision.HIGHEST)                # (5H, Wp)

    def vbox(m):  # vertical stage of the box filter for map m
        return jnp.dot(A, Yr[m * H:(m + 1) * H, :],
                       preferred_element_type=jnp.float32,
                       precision=jax.lax.Precision.HIGHEST)

    inv_ws = 1.0 / win_size
    I_sum = vbox(0)
    J_sum = vbox(1)
    u_I = I_sum * inv_ws
    u_J = J_sum * inv_ws

    # Consume each remaining boxed map immediately (lower peak liveness).
    I_var = vbox(2) - 2.0 * u_I * I_sum + u_I * u_I * win_size
    J_var = vbox(3) - 2.0 * u_J * J_sum + u_J * u_J * win_size
    cross = vbox(4) - u_J * I_sum - u_I * J_sum + u_I * u_J * win_size

    cc = (cross * cross) * pl.reciprocal(I_var * J_var + EPS, approx=True)
    out_ref[...] = jnp.full(out_ref.shape, jnp.sum(cc), dtype=out_ref.dtype)


@functools.partial(jax.jit, static_argnames=("win",))
def ncc_loss(y_pred, y_true, win=WIN):
    """Equivalent of NCC(win=None)(y_pred, y_true) for 2D NCHW single-channel inputs."""
    bs, c, H, W = y_pred.shape
    assert c == 1 and y_true.shape[1] == 1, "NCC box filter requires single-channel input"
    assert _vmem_estimate(H, W) <= VMEM_BUDGET, (
        "image too large for the single-block NCC kernel; needs row tiling / shift-add")

    half = win // 2
    Bblk = _choose_bblk(bs, H, W)
    G = bs // Bblk
    Wp = Bblk * W

    I = y_true.astype(jnp.float32).reshape(bs, H, W)   # torch: I = y_true
    J = y_pred.astype(jnp.float32).reshape(bs, H, W)   # torch: J = y_pred

    def pack(x):  # (bs, H, W) -> (G, H, Bblk*W): images side-by-side on the lane axis
        return x.reshape(G, Bblk, H, W).transpose(0, 2, 1, 3).reshape(G, H, Wp)

    Ip, Jp = pack(I), pack(J)

    kernel = functools.partial(_ncc_kernel, H=H, W=W, Bblk=Bblk, half=half,
                               win_size=float(win * win))

    vmem_limit = int(min(max(2 * _vmem_estimate(H, Wp), 32 * 1024 * 1024),
                         64 * 1024 * 1024))

    sums = pl.pallas_call(
        kernel,
        out_shape=jax.ShapeDtypeStruct((G, 1, 1), jnp.float32),
        grid_spec=pltpu.PrefetchScalarGridSpec(
            num_scalar_prefetch=0,
            grid=(G,),
            in_specs=[
                pl.BlockSpec((1, H, Wp), lambda g: (g, 0, 0)),   # I (packed slab)
                pl.BlockSpec((1, H, Wp), lambda g: (g, 0, 0)),   # J (packed slab)
            ],
            out_specs=pl.BlockSpec((1, 1, 1), lambda g: (g, 0, 0)),
        ),
        compiler_params=pltpu.CompilerParams(
            dimension_semantics=("parallel",),
            vmem_limit_bytes=vmem_limit,
        ),
    )(Ip, Jp)

    # torch: -mean(cc) over the full [bs, 1, H, W] cc tensor
    return -(jnp.sum(sums) / (bs * H * W))


def _reference_loss(y_pred, y_true, win=WIN):
    """Pure-JAX replica of the PyTorch forward (lax.conv box filter) for validation."""
    I = y_true.astype(jnp.float32)
    J = y_pred.astype(jnp.float32)
    pad = win // 2
    filt = jnp.ones((1, 1, win, win), jnp.float32)

    def conv(x):
        return jax.lax.conv_general_dilated(
            x, filt, window_strides=(1, 1),
            padding=[(pad, pad), (pad, pad)],
            dimension_numbers=("NCHW", "OIHW", "NCHW"),
            precision=jax.lax.Precision.HIGHEST)

    I_sum = conv(I)
    J_sum = conv(J)
    I2_sum = conv(I * I)
    J2_sum = conv(J * J)
    IJ_sum = conv(I * J)

    win_size = float(win * win)
    u_I = I_sum / win_size
    u_J = J_sum / win_size
    cross = IJ_sum - u_J * I_sum - u_I * J_sum + u_I * u_J * win_size
    I_var = I2_sum - 2.0 * u_I * I_sum + u_I * u_I * win_size
    J_var = J2_sum - 2.0 * u_J * J_sum + u_J * u_J * win_size
    cc = cross * cross / (I_var * J_var + EPS)
    return -jnp.mean(cc)


if __name__ == "__main__":
    key = jax.random.PRNGKey(0)
    k1, k2 = jax.random.split(key)
    # small shapes consistent with NCC's 2D path: [bs, 1, H, W]
    y_pred = jax.random.uniform(k1, (2, 1, 16, 16), dtype=jnp.float32)
    y_true = jax.random.uniform(k2, (2, 1, 16, 16), dtype=jnp.float32)

    loss = jax.block_until_ready(ncc_loss(y_pred, y_true))
    ref = jax.block_until_ready(_reference_loss(y_pred, y_true))

    assert jnp.isfinite(loss), "kernel produced non-finite loss"
    assert jnp.allclose(loss, ref, rtol=1e-3, atol=1e-3), (loss, ref)

    print("KERNEL_OK")
</pallas_src>

<mosaic_0001>
module attributes {stable_mosaic.version = 11 : i64} {
  func.func @_ncc_kernel(%arg0: i32, %arg1: memref<1x16x32xf32, #tpu.memory_space<vmem>>, %arg2: memref<1x16x32xf32, #tpu.memory_space<vmem>>, %arg3: memref<1x1x1xf32, #tpu.memory_space<vmem>>) attributes {dimension_semantics = [#tpu.dimension_semantics<parallel>], iteration_bounds = array<i64: 1>, scalar_prefetch = 0 : i64, scratch_operands = 0 : i64, tpu.core_type = #tpu.core_type<tc>, window_params = [{transform_indices = @transform_0, window_bounds = array<i64: 1, 16, 32>}, {transform_indices = @transform_1, window_bounds = array<i64: 1, 16, 32>}, {transform_indices = @transform_2, window_bounds = array<i64: 1, 1, 1>}]} {
    %c0 = arith.constant 0 : index
    %c0_0 = arith.constant 0 : index
    %c0_1 = arith.constant 0 : index
    %0 = vector.load %arg1[%c0, %c0_0, %c0_1] : memref<1x16x32xf32, #tpu.memory_space<vmem>>, vector<1x16x32xf32>
    %1 = vector.shape_cast %0 : vector<1x16x32xf32> to vector<16x32xf32>
    %c0_2 = arith.constant 0 : index
    %c0_3 = arith.constant 0 : index
    %c0_4 = arith.constant 0 : index
    %2 = vector.load %arg2[%c0_2, %c0_3, %c0_4] : memref<1x16x32xf32, #tpu.memory_space<vmem>>, vector<1x16x32xf32>
    %3 = vector.shape_cast %2 : vector<1x16x32xf32> to vector<16x32xf32>
    %4 = tpu.iota {dimensions = array<i32: 0>} : vector<16x16xi32>
    %5 = tpu.iota {dimensions = array<i32: 1>} : vector<16x16xi32>
    %6 = arith.subi %4, %5 : vector<16x16xi32>
    %c4_i32 = arith.constant 4 : i32
    %7 = vector.broadcast %c4_i32 : i32 to vector<16x16xi32>
    %8 = arith.cmpi sle, %6, %7 : vector<16x16xi32>
    %c-4_i32 = arith.constant -4 : i32
    %9 = vector.broadcast %c-4_i32 : i32 to vector<16x16xi32>
    %10 = arith.cmpi sge, %6, %9 : vector<16x16xi32>
    %11 = arith.andi %8, %10 : vector<16x16xi1>
    %12 = arith.extui %11 : vector<16x16xi1> to vector<16x16xi32>
    %13 = arith.sitofp %12 : vector<16x16xi32> to vector<16x16xf32>
    %14 = tpu.iota {dimensions = array<i32: 0>} : vector<32x32xi32>
    %15 = tpu.iota {dimensions = array<i32: 1>} : vector<32x32xi32>
    %16 = arith.subi %14, %15 : vector<32x32xi32>
    %c4_i32_5 = arith.constant 4 : i32
    %17 = vector.broadcast %c4_i32_5 : i32 to vector<32x32xi32>
    %18 = arith.cmpi sle, %16, %17 : vector<32x32xi32>
    %c-4_i32_6 = arith.constant -4 : i32
    %19 = vector.broadcast %c-4_i32_6 : i32 to vector<32x32xi32>
    %20 = arith.cmpi sge, %16, %19 : vector<32x32xi32>
    %21 = arith.andi %18, %20 : vector<32x32xi1>
    %c16_i32 = arith.constant 16 : i32
    %22 = vector.broadcast %c16_i32 : i32 to vector<32x32xi32>
    %23 = arith.cmpi slt, %14, %22 : vector<32x32xi32>
    %c16_i32_7 = arith.constant 16 : i32
    %24 = vector.broadcast %c16_i32_7 : i32 to vector<32x32xi32>
    %25 = arith.cmpi slt, %15, %24 : vector<32x32xi32>
    %26 = arith.xori %23, %25 : vector<32x32xi1>
    %cst = arith.constant dense<true> : vector<32x32xi1>
    %27 = arith.xori %26, %cst : vector<32x32xi1>
    %28 = arith.andi %21, %27 : vector<32x32xi1>
    %29 = arith.extui %28 : vector<32x32xi1> to vector<32x32xi32>
    %30 = arith.sitofp %29 : vector<32x32xi32> to vector<32x32xf32>
    %31 = arith.mulf %1, %1 : vector<16x32xf32>
    %32 = arith.mulf %3, %3 : vector<16x32xf32>
    %33 = arith.mulf %1, %3 : vector<16x32xf32>
    %34 = tpu.concatenate %1, %3, %31, %32, %33 in 0 : vector<16x32xf32>, vector<16x32xf32>, vector<16x32xf32>, vector<16x32xf32>, vector<16x32xf32> -> vector<80x32xf32>
    %cst_8 = arith.constant dense<0.000000e+00> : vector<80x32xf32>
    %35 = tpu.matmul %34, %30, %cst_8 {dimension_numbers = #tpu.dot_dimension_numbers<[1], [0], [0], [1], [0, 0, 1, 1], [], []>, precision = #tpu.contract_precision<fp32>} : vector<80x32xf32>, vector<32x32xf32>, vector<80x32xf32> -> vector<80x32xf32>
    %36 = vector.extract_strided_slice %35 {offsets = [0, 0], sizes = [16, 32], strides = [1, 1]} : vector<80x32xf32> to vector<16x32xf32>
    %cst_9 = arith.constant dense<0.000000e+00> : vector<16x32xf32>
    %37 = tpu.matmul %13, %36, %cst_9 {dimension_numbers = #tpu.dot_dimension_numbers<[1], [0], [0], [1], [0, 0, 1, 1], [], []>, precision = #tpu.contract_precision<fp32>} : vector<16x16xf32>, vector<16x32xf32>, vector<16x32xf32> -> vector<16x32xf32>
    %38 = vector.extract_strided_slice %35 {offsets = [16, 0], sizes = [16, 32], strides = [1, 1]} : vector<80x32xf32> to vector<16x32xf32>
    %cst_10 = arith.constant dense<0.000000e+00> : vector<16x32xf32>
    %39 = tpu.matmul %13, %38, %cst_10 {dimension_numbers = #tpu.dot_dimension_numbers<[1], [0], [0], [1], [0, 0, 1, 1], [], []>, precision = #tpu.contract_precision<fp32>} : vector<16x16xf32>, vector<16x32xf32>, vector<16x32xf32> -> vector<16x32xf32>
    %cst_11 = arith.constant 0.0123456791 : f32
    %40 = vector.broadcast %cst_11 : f32 to vector<16x32xf32>
    %41 = arith.mulf %37, %40 : vector<16x32xf32>
    %cst_12 = arith.constant 0.0123456791 : f32
    %42 = vector.broadcast %cst_12 : f32 to vector<16x32xf32>
    %43 = arith.mulf %39, %42 : vector<16x32xf32>
    %44 = vector.extract_strided_slice %35 {offsets = [32, 0], sizes = [16, 32], strides = [1, 1]} : vector<80x32xf32> to vector<16x32xf32>
    %cst_13 = arith.constant dense<0.000000e+00> : vector<16x32xf32>
    %45 = tpu.matmul %13, %44, %cst_13 {dimension_numbers = #tpu.dot_dimension_numbers<[1], [0], [0], [1], [0, 0, 1, 1], [], []>, precision = #tpu.contract_precision<fp32>} : vector<16x16xf32>, vector<16x32xf32>, vector<16x32xf32> -> vector<16x32xf32>
    %cst_14 = arith.constant 2.000000e+00 : f32
    %46 = vector.broadcast %cst_14 : f32 to vector<16x32xf32>
    %47 = arith.mulf %46, %41 : vector<16x32xf32>
    %48 = arith.mulf %47, %37 : vector<16x32xf32>
    %49 = arith.subf %45, %48 : vector<16x32xf32>
    %50 = arith.mulf %41, %41 : vector<16x32xf32>
    %cst_15 = arith.constant 8.100000e+01 : f32
    %51 = vector.broadcast %cst_15 : f32 to vector<16x32xf32>
    %52 = arith.mulf %50, %51 : vector<16x32xf32>
    %53 = arith.addf %49, %52 : vector<16x32xf32>
    %54 = vector.extract_strided_slice %35 {offsets = [48, 0], sizes = [16, 32], strides = [1, 1]} : vector<80x32xf32> to vector<16x32xf32>
    %cst_16 = arith.constant dense<0.000000e+00> : vector<16x32xf32>
    %55 = tpu.matmul %13, %54, %cst_16 {dimension_numbers = #tpu.dot_dimension_numbers<[1], [0], [0], [1], [0, 0, 1, 1], [], []>, precision = #tpu.contract_precision<fp32>} : vector<16x16xf32>, vector<16x32xf32>, vector<16x32xf32> -> vector<16x32xf32>
    %cst_17 = arith.constant 2.000000e+00 : f32
    %56 = vector.broadcast %cst_17 : f32 to vector<16x32xf32>
    %57 = arith.mulf %56, %43 : vector<16x32xf32>
    %58 = arith.mulf %57, %39 : vector<16x32xf32>
    %59 = arith.subf %55, %58 : vector<16x32xf32>
    %60 = arith.mulf %43, %43 : vector<16x32xf32>
    %cst_18 = arith.constant 8.100000e+01 : f32
    %61 = vector.broadcast %cst_18 : f32 to vector<16x32xf32>
    %62 = arith.mulf %60, %61 : vector<16x32xf32>
    %63 = arith.addf %59, %62 : vector<16x32xf32>
    %64 = vector.extract_strided_slice %35 {offsets = [64, 0], sizes = [16, 32], strides = [1, 1]} : vector<80x32xf32> to vector<16x32xf32>
    %cst_19 = arith.constant dense<0.000000e+00> : vector<16x32xf32>
    %65 = tpu.matmul %13, %64, %cst_19 {dimension_numbers = #tpu.dot_dimension_numbers<[1], [0], [0], [1], [0, 0, 1, 1], [], []>, precision = #tpu.contract_precision<fp32>} : vector<16x16xf32>, vector<16x32xf32>, vector<16x32xf32> -> vector<16x32xf32>
    %66 = arith.mulf %43, %37 : vector<16x32xf32>
    %67 = arith.subf %65, %66 : vector<16x32xf32>
    %68 = arith.mulf %41, %39 : vector<16x32xf32>
    %69 = arith.subf %67, %68 : vector<16x32xf32>
    %70 = arith.mulf %41, %43 : vector<16x32xf32>
    %cst_20 = arith.constant 8.100000e+01 : f32
    %71 = vector.broadcast %cst_20 : f32 to vector<16x32xf32>
    %72 = arith.mulf %70, %71 : vector<16x32xf32>
    %73 = arith.addf %69, %72 : vector<16x32xf32>
    %74 = arith.mulf %73, %73 : vector<16x32xf32>
    %75 = arith.mulf %53, %63 : vector<16x32xf32>
    %cst_21 = arith.constant 9.99999974E-6 : f32
    %76 = vector.broadcast %cst_21 : f32 to vector<16x32xf32>
    %77 = arith.addf %75, %76 : vector<16x32xf32>
    %78 = tpu.reciprocal %77 {approx = true} : vector<16x32xf32> -> vector<16x32xf32>
    %79 = arith.mulf %74, %78 : vector<16x32xf32>
    %80 = vector.shape_cast %79 : vector<16x32xf32> to vector<1x16x32xf32>
    %cst_22 = arith.constant dense<0.000000e+00> : vector<1xf32>
    %81 = vector.multi_reduction <add>, %80, %cst_22 [1, 2] : vector<1x16x32xf32> to vector<1xf32>
    %82 = vector.shape_cast %81 : vector<1xf32> to vector<1x1x1xf32>
    %83 = vector.extract %82[0, 0, 0] : f32 from vector<1x1x1xf32>
    %84 = vector.broadcast %83 : f32 to vector<1x1x1xf32>
    %c0_23 = arith.constant 0 : index
    %c0_24 = arith.constant 0 : index
    %c0_25 = arith.constant 0 : index
    %85 = vector.load %arg3[%c0_23, %c0_24, %c0_25] : memref<1x1x1xf32, #tpu.memory_space<vmem>>, vector<1x1x1xf32>
    tpu.vector_store %arg3[%c0_23, %c0_24, %c0_25], %84 {strides = array<i32>} : memref<1x1x1xf32, #tpu.memory_space<vmem>>, vector<1x1x1xf32>,
    return
  }
  func.func @transform_0(%arg0: i32) -> (i32, i32, i32) {
    %c0_i32 = arith.constant 0 : i32
    %c0_i32_0 = arith.constant 0 : i32
    %c0_i32_1 = arith.constant 0 : i32
    return %arg0, %c0_i32, %c0_i32_0 : i32, i32, i32
  }
  func.func @transform_1(%arg0: i32) -> (i32, i32, i32) {
    %c0_i32 = arith.constant 0 : i32
    %c0_i32_0 = arith.constant 0 : i32
    %c0_i32_1 = arith.constant 0 : i32
    return %arg0, %c0_i32, %c0_i32_0 : i32, i32, i32
  }
  func.func @transform_2(%arg0: i32) -> (i32, i32, i32) {
    %c0_i32 = arith.constant 0 : i32
    %c0_i32_0 = arith.constant 0 : i32
    %c0_i32_1 = arith.constant 0 : i32
    return %arg0, %c0_i32, %c0_i32_0 : i32, i32, i32
  }
}

</mosaic_0001>

<bundles_post_ra>
// kernel: ncc_loss.1
= control target key start
LH: loop header
LB: loop body
LE: loop exit
PB: predicated region body
PF: predicated region fallthrough
CT: control target
= control target key end

     0   :  { %v16_v0 = vlaneseq  ;;  %vm74_vm0 = vcmask 261120   ;;  %s2128_s0 = inlined_call_operand.vmem [shape: f32[1,16,32], index: 0, kind: input, shape index: {}]   ;;  %s2129_s1 = inlined_call_operand.vmem [shape: f32[1,16,32], index: 1, kind: input, shape index: {}]   ;;  %s2130_s2 = inlined_call_operand.hbm [shape: f32[1,1,1], index: 2, kind: output, shape index: {}]  }
   0x1   :  { %v1715_v1 = vld [vmem:[%s2128_s0] sm:$0xff]  ;;  %v1720_v2 = vld [vmem:[%s2128_s0 + $0x8] sm:$0xff] }
   0x2   :  { %7 = vsyncpa [#allocation3], 0  ;;  %v17_v3 = vshrl.u32 %v16_v0, 7  ;;  %v20_v4 = vand.u32 127, %v16_v0  ;;  %v76_v5 = vsel %vm74_vm0, %v1715_v1, 0  ;;  %v79_v6 = vsel %vm74_vm0, %v1720_v2, 0 }
   0x3   :  { %v1726_v7 = vand.u32 4294901760, %v76_v5  ;;  %vm1693_vm2 = vmmov 1   ;;  %v1735_v14 = vand.u32 4294901760, %v79_v6  ;;  %v1745_v20 = vld [vmem:[%s2129_s1] sm:$0xff]  ;;  %v1694_v22 = vmov 0.0   ;;  %v1821_v46 = vld [vmem:[%s2129_s1 + $0x8] sm:$0xff] }
   0x4   :  { %v34_v8 = vadd.s32 24, %v17_v3  ;;  %vm47_vm1 = vcmp.lt.s32.totalorder %v20_v4, 16  ;;  %v33_v9 = vadd.s32 16, %v17_v3  ;;  %v18_v10 = vadd.s32 8, %v17_v3  ;;  %s1696_s1 = smov [#allocation2]   ;;  %s1600_s19 = sshll.u32 %s2130_s2, 4  ;;  %s1601_s19 = int_to_ptr.hbm [resolvable:$true] %s1600_s19 }
   0x5   :  { %vm1728_vm3 = vmxor %vm47_vm1, %vm1693_vm2  ;;  %v21_v12 = vsub.s32 %v17_v3, %v20_v4  ;;  %v1733_v13 = vsub.f32 %v76_v5, %v1726_v7  ;;  %v1756_v24 = vsub.f32 %v79_v6, %v1735_v14  ;;  %v82_v27 = vsel %vm74_vm0, %v1745_v20, 0  ;;  %s1598_s16 = sshll.u32 %s1696_s1, 4  ;;  %s1599_s16 = int_to_ptr.vmem [resolvable:$true] %s1598_s16 }
   0x6   :  { %v36_v15 = vsub.s32 %v34_v8, %v20_v4  ;;  %v35_v16 = vsub.s32 %v33_v9, %v20_v4  ;;  %v22_v17 = vsub.s32 %v18_v10, %v20_v4  ;;  %vm48_vm4 = vmxor %vm1693_vm2, %vm47_vm1  ;;  %v1695_v28 = vmov 1.0  }
   0x7   :  { %vm1737_vm5 = vmxor %vm48_vm4, %vm1693_vm2  ;;  %vm23_vm6 = vcmp.le.s32.totalorder %v21_v12, 4  ;;  %vm25_vm7 = vcmp.ge.s32.totalorder %v21_v12, 4294967292  ;;  %v127_v19 = vand.u32 4294901760, %v1733_v13  ;;  %v135_v33 = vand.u32 4294901760, %v1756_v24 }
   0x8   :  { %vm38_vm8 = vcmp.le.s32.totalorder %v36_v15, 4  ;;  %vm40_vm9 = vcmp.ge.s32.totalorder %v36_v15, 4294967292  ;;  %vm37_vm10 = vcmp.le.s32.totalorder %v35_v16, 4  ;;  %vm39_vm11 = vcmp.ge.s32.totalorder %v35_v16, 4294967292  ;;  %vm1747_vm12 = vmand %vm23_vm6, %vm25_vm7 }
   0x9   :  { %vm42_vm13 = vmand %vm38_vm8, %vm40_vm9  ;;  %v1753_v23 = vsel %vm1747_vm12, 1.0, %v1694_v22  ;;  %vm24_vm15 = vcmp.le.s32.totalorder %v22_v17, 4  ;;  %vm26_vm1 = vcmp.ge.s32.totalorder %v22_v17, 4294967292  ;;  %v128_v26 = vsub.f32 %v1733_v13, %v127_v19 }
   0xa   :  { %vm1760_vm14 = vmand %vm42_vm13, %vm1728_vm3  ;;  %v1790_v34 = vand.u32 4294901760, %v82_v27  ;;  %v136_v48 = vsub.f32 %v1756_v24, %v135_v33  ;;  %v85_v54 = vsel %vm74_vm0, %v1821_v46, 0  ;;  %v68_v63 = vmul.f32 %v1715_v1, %v1715_v1 }
   0xb   :  { %1615 = vmatpush.msk.msra.mxu0 %vm1760_vm14, %v1695_v28  ;;  %vm41_vm2 = vmand %vm37_vm10, %vm39_vm11  ;;  %v1614_v29 = vsel %vm1760_vm14, 1.0, %v1694_v22  ;;  %1619 = vmatpush.msk.msra.mxu3 %vm1760_vm14, %v1695_v28  ;;  %v129_v37 = vand.u32 4294901760, %v128_v26  ;;  %v1834_v61 = vand.u32 4294901760, %v85_v54  ;;  %v69_v9 = vmul.f32 %v1720_v2, %v1720_v2 }
   0xc   :  { %vm1777_vm4 = vmand %vm41_vm2, %vm1728_vm3  ;;  %v219_v31 = vsub.f32 %v1614_v29, %v1614_v29  ;;  %v142_v52 = vsub.f32 %v82_v27, %v1790_v34  ;;  %v137_v59 = vand.u32 4294901760, %v136_v48  ;;  %v88_v4 = vsel %vm74_vm0, %v68_v63, 0 }
   0xd   :  { %1616 = vmatpush.msk.msra.mxu0 %vm1777_vm4, %v1695_v28  ;;  %vm28_vm6 = vmand %vm24_vm15, %vm26_vm1  ;;  %v1613_v32 = vsel %vm1777_vm4, 1.0, %v1694_v22  ;;  %1620 = vmatpush.msk.msra.mxu3 %vm1777_vm4, %v1695_v28  ;;  %v150_v3 = vsub.f32 %v85_v54, %v1834_v61  ;;  %v1845_v8 = vand.u32 4294901760, %v88_v4  ;;  %v91_v12 = vsel %vm74_vm0, %v69_v9, 0 }
   0xe   :  { %v1792_v35 = vsel %vm28_vm6, 1.0, %v1694_v22  ;;  %vm1796_vm3 = vmand %vm28_vm6, %vm1737_vm5  ;;  %297 = vmatpush.msra.mxu2 %v219_v31  ;;  %v225_v38 = vsub.f32 %v1613_v32, %v1613_v32  ;;  %v220_v39 = vand.u32 4294901760, %v219_v31  ;;  %v143_v60 = vand.u32 4294901760, %v142_v52 }
   0xf   :  { %1617 = vmatpush.msk.msra.mxu0 %vm1796_vm3, %v1695_v28  ;;  %vm1807_vm7 = vmand %vm1747_vm12, %vm1737_vm5  ;;  %v1612_v41 = vsel %vm1796_vm3, 1.0, %v1694_v22  ;;  %1621 = vmatpush.msk.msra.mxu3 %vm1796_vm3, %v1695_v28  ;;  %v151_v6 = vand.u32 4294901760, %v150_v3  ;;  %v158_v11 = vsub.f32 %v88_v4, %v1845_v8  ;;  %v1861_v16 = vand.u32 4294901760, %v91_v12 }
  0x10   :  { %300 = vmatpush.msra.mxu2 %v225_v38  ;;  %v221_v42 = vsub.f32 %v219_v31, %v220_v39  ;;  %v231_v43 = vsub.f32 %v1612_v41, %v1612_v41  ;;  %v226_v44 = vand.u32 4294901760, %v225_v38  ;;  %v1611_v45 = vsel %vm1807_vm7, 1.0, %v1694_v22 }
  0x11   :  { %1618 = vmatpush.msk.msra.mxu0 %vm1807_vm7, %v1695_v28  ;;  %v237_v47 = vsub.f32 %v1611_v45, %v1611_v45  ;;  %1622 = vmatpush.msk.msra.mxu3 %vm1807_vm7, %v1695_v28  ;;  %v144_v0 = vsub.f32 %v142_v52, %v143_v60  ;;  %v152_v10 = vsub.f32 %v150_v3, %v151_v6  ;;  %v159_v15 = vand.u32 4294901760, %v158_v11 }
  0x12   :  { %130 = vmatmul.f32.vlgmr.msra.gmra.mxu0 %v129_v37  ;;  %v222_v49 = vand.u32 4294901760, %v221_v42  ;;  %303 = vmatpush.msra.mxu2 %v231_v43  ;;  %v227_v50 = vsub.f32 %v225_v38, %v226_v44  ;;  %v232_v51 = vand.u32 4294901760, %v231_v43  ;;  %v70_v17 = vmul.f32 %v1745_v20, %v1745_v20 }
  0x13   :  { %381 = vmatmul.f32.vlgmr.msra.gmra.mxu3 %v127_v19  ;;  %v238_v53 = vand.u32 4294901760, %v237_v47  ;;  %454 = vmatpush.msrb.mxu0 %v220_v39  ;;  %v145_v5 = vand.u32 4294901760, %v144_v0  ;;  %v160_v18 = vsub.f32 %v158_v11, %v159_v15  ;;  %v166_v19 = vsub.f32 %v91_v12, %v1861_v16 }
  0x14   :  { %223 = vmatpush.msra.mxu1 %v222_v49  ;;  %v228_v55 = vand.u32 4294901760, %v227_v50  ;;  %306 = vmatpush.msra.mxu2 %v237_v47  ;;  %v233_v56 = vsub.f32 %v231_v43, %v232_v51  ;;  %v94_v21 = vsel %vm74_vm0, %v70_v17, 0  ;;  %v71_v26 = vmul.f32 %v1821_v46, %v1821_v46 }
  0x15   :  { %309 = vmatmul.f32.vlgmr.msra.gmra.mxu2 %v1733_v13  ;;  %v239_v57 = vsub.f32 %v237_v47, %v238_v53  ;;  %458 = vmatpush.msrb.mxu0 %v226_v44  ;;  %v153_v13 = vand.u32 4294901760, %v152_v10  ;;  %v161_v22 = vand.u32 4294901760, %v160_v18  ;;  %v1868_v25 = vand.u32 4294901760, %v94_v21 }
  0x16   :  { %229 = vmatpush.msra.mxu1 %v228_v55  ;;  %v234_v58 = vand.u32 4294901760, %v233_v56  ;;  %v97_v29 = vsel %vm74_vm0, %v71_v26, 0  ;;  %v73_v42 = vmul.f32 %v1821_v46, %v1720_v2  ;;  %vm569_vm5 = vcmask 130048  }
  0x17   :  { %v240_v62 = vand.u32 4294901760, %v239_v57  ;;  %462 = vmatpush.msrb.mxu0 %v232_v51  ;;  %v181_v32 = vand.u32 4294901760, %v97_v29  ;;  %v571_v26 = vsel %vm569_vm5, %v1753_v23, 0  ;;  %vm1591_vm8 = vcmask 0  }
  0x18   :  { %235 = vmatpush.msra.mxu1 %v234_v58 }
  0x19   :  { %466 = vmatpush.msrb.mxu0 %v238_v53  ;;  %v182_v37 = vsub.f32 %v97_v29, %v181_v32 }
  0x1a   :  { %138 = vmatmul.f32.gmra.mxu0 %v137_v59  ;;  %241 = vmatpush.msra.mxu1 %v240_v62 }
  0x1b   :  { %243 = vmatmul.f32.vlgmr.msra.gmra.mxu1 %v1726_v7  ;;  %387 = vmatmul.f32.gmra.mxu3 %v135_v33  ;;  %v72_v33 = vmul.f32 %v1745_v20, %v1715_v1  ;;  %v183_v40 = vand.u32 4294901760, %v182_v37  ;;  %v103_v1 = vsel %vm74_vm0, %v73_v42, 0 }
  0x1c   :  { %1623 = vmatpush.msk.msrb.mxu1 %vm1760_vm14, %v1695_v28  ;;  %v197_v47 = vand.u32 4294901760, %v103_v1 }
  0x1d   :  { %314 = vmatmul.f32.gmra.mxu2 %v1756_v24  ;;  %v167_v24 = vand.u32 4294901760, %v166_v19  ;;  %v100_v38 = vsel %vm74_vm0, %v72_v33, 0  ;;  %v184_v43 = vsub.f32 %v182_v37, %v183_v40 }
  0x1e   :  { %1624 = vmatpush.msk.msrb.mxu1 %vm1777_vm4, %v1695_v28  ;;  %v189_v41 = vand.u32 4294901760, %v100_v38  ;;  %v198_v49 = vsub.f32 %v103_v1, %v197_v47 }
  0x1f   :  { %v168_v27 = vsub.f32 %v166_v19, %v167_v24  ;;  %v185_v20 = vand.u32 4294901760, %v184_v43 }
  0x20   :  { %1625 = vmatpush.msk.msrb.mxu1 %vm1796_vm3, %v1695_v28  ;;  %v190_v44 = vsub.f32 %v100_v38, %v189_v41  ;;  %v199_v46 = vand.u32 4294901760, %v198_v49 }
  0x21   :  { %v169_v30 = vand.u32 4294901760, %v168_v27 }
  0x22   :  { %146 = vmatmul.f32.gmra.mxu0 %v145_v5  ;;  %1626 = vmatpush.msk.msrb.mxu1 %vm1807_vm7, %v1695_v28  ;;  %v174_v28 = vsub.f32 %v94_v21, %v1868_v25  ;;  %v191_v45 = vand.u32 4294901760, %v190_v44  ;;  %v200_v50 = vsub.f32 %v198_v49, %v199_v46 }
  0x23   :  { %247 = vmatmul.f32.gmra.mxu1 %v1735_v14  ;;  %393 = vmatmul.f32.gmra.mxu3 %v143_v60 }
  0x24   :  { %v175_v31 = vand.u32 4294901760, %v174_v28  ;;  %v192_v48 = vsub.f32 %v190_v44, %v191_v45  ;;  %v201_v51 = vand.u32 4294901760, %v200_v50 }
  0x25   :  { %319 = vmatmul.f32.gmra.mxu2 %v142_v52 }
  0x26   :  { %v176_v36 = vsub.f32 %v174_v28, %v175_v31  ;;  %v193_v2 = vand.u32 4294901760, %v192_v48 }
  0x28   :  { %v177_v39 = vand.u32 4294901760, %v176_v36 }
  0x2a   :  { %154 = vmatmul.f32.gmra.mxu0 %v153_v13 }
  0x2b   :  { %251 = vmatmul.f32.gmra.mxu1 %v1790_v34  ;;  %399 = vmatmul.f32.gmra.mxu3 %v151_v6 }
  0x2d   :  { %324 = vmatmul.f32.gmra.mxu2 %v150_v3 }
  0x32   :  { %162 = vmatmul.f32.gmra.mxu0 %v161_v22 }
  0x33   :  { %255 = vmatmul.f32.gmra.mxu1 %v1834_v61  ;;  %405 = vmatmul.f32.gmra.mxu3 %v159_v15 }
  0x35   :  { %329 = vmatmul.f32.gmra.mxu2 %v158_v11 }
  0x3a   :  { %170 = vmatmul.f32.gmra.mxu0 %v169_v30  ;;  %v1916_v30 = vsub.f32 %v571_v26, %v571_v26 }
  0x3b   :  { %259 = vmatmul.f32.gmra.mxu1 %v1845_v8  ;;  %411 = vmatmul.f32.gmra.mxu3 %v167_v24 }
  0x3c   :  { %v1919_v36 = vand.u32 4294901760, %v1916_v30 }
  0x3d   :  { %334 = vmatmul.f32.gmra.mxu2 %v166_v19 }
  0x42   :  { %178 = vmatmul.f32.gmra.mxu0 %v177_v39  ;;  %v574_v39 = vsel %vm569_vm5, %v1792_v35, 0 }
  0x43   :  { %263 = vmatmul.f32.gmra.mxu1 %v1861_v16  ;;  %417 = vmatmul.f32.gmra.mxu3 %v175_v31  ;;  %v1925_v1 = vsub.f32 %v574_v39, %v574_v39 }
  0x45   :  { %339 = vmatmul.f32.gmra.mxu2 %v174_v28 }
  0x4a   :  { %186 = vmatmul.f32.gmra.mxu0 %v185_v20 }
  0x4b   :  { %267 = vmatmul.f32.gmra.mxu1 %v1868_v25  ;;  %423 = vmatmul.f32.gmra.mxu3 %v183_v40 }
  0x4d   :  { %344 = vmatmul.f32.gmra.mxu2 %v182_v37 }
  0x52   :  { %194 = vmatmul.f32.gmra.mxu0 %v193_v2 }
  0x53   :  { %271 = vmatmul.f32.gmra.mxu1 %v181_v32  ;;  %429 = vmatmul.f32.gmra.mxu3 %v191_v45 }
  0x55   :  { %349 = vmatmul.f32.gmra.mxu2 %v190_v44  ;;  %v597_v44 = vsub.f32 %v1916_v30, %v1919_v36 }
  0x57   :  { %v1927_v2 = vand.u32 4294901760, %v597_v44 }
  0x5a   :  { %202 = vmatmul.f32.gmra.mxu0 %v201_v51 }
  0x5b   :  { %275 = vmatmul.f32.gmra.mxu1 %v189_v41  ;;  %435 = vmatmul.f32.gmra.mxu3 %v199_v46  ;;  %v1930_v46 = vand.u32 4294901760, %v1925_v1 }
  0x5d   :  { %354 = vmatmul.f32.gmra.mxu2 %v198_v49 }
  0x62   :  { %468 = vmatmul.f32.vlgmr.msrb.gmra.mxu0 %v1726_v7 }
  0x63   :  { %279 = vmatmul.f32.gmra.mxu1 %v197_v47 }
  0x6a   :  { %472 = vmatmul.f32.gmra.mxu0 %v1735_v14 }
  0x6b   :  { %529 = vmatmul.f32.vlgmr.msrb.gmra.mxu1 %v1726_v7 }
  0x72   :  { %476 = vmatmul.f32.gmra.mxu0 %v1790_v34 }
  0x73   :  { %533 = vmatmul.f32.gmra.mxu1 %v1735_v14 }
  0x7a   :  { %480 = vmatmul.f32.gmra.mxu0 %v1834_v61 }
  0x7b   :  { %537 = vmatmul.f32.gmra.mxu1 %v1790_v34 }
  0x82   :  { %484 = vmatmul.f32.gmra.mxu0 %v1845_v8 }
  0x83   :  { %541 = vmatmul.f32.gmra.mxu1 %v1834_v61 }
  0x8a   :  { %488 = vmatmul.f32.gmra.mxu0 %v1861_v16 }
  0x8b   :  { %545 = vmatmul.f32.gmra.mxu1 %v1845_v8 }
  0x8f   :  { %v131_v52 = vpop.f32.mrf.mxu0 }
  0x92   :  { %492 = vmatmul.f32.gmra.mxu0 %v1868_v25 }
  0x93   :  { %549 = vmatmul.f32.gmra.mxu1 %v1861_v16 }
  0x96   :  { %v382_v5 = vpop.f32.mrf.mxu3 }
  0x97   :  { %v139_v7 = vpop.f32.mrf.mxu0 }
  0x98   :  { %v244_v53 = vpop.f32.mrf.mxu1  ;;  %v310_v3 = vpop.f32.mrf.mxu2 }
  0x99   :  { %v245_v15 = vadd.f32 %v244_v53, %v131_v52 }
  0x9a   :  { %496 = vmatmul.f32.gmra.mxu0 %v181_v32 }
  0x9b   :  { %553 = vmatmul.f32.gmra.mxu1 %v1868_v25  ;;  %v311_v19 = vadd.f32 %v310_v3, %v245_v15 }
  0x9d   :  { %v383_v24 = vadd.f32 %v382_v5, %v311_v19 }
  0x9e   :  { %v388_v13 = vpop.f32.mrf.mxu3 }
  0x9f   :  { %v147_v14 = vpop.f32.mrf.mxu0 }
  0xa0   :  { %v248_v34 = vpop.f32.mrf.mxu1  ;;  %v315_v9 = vpop.f32.mrf.mxu2 }
  0xa1   :  { %v249_v25 = vadd.f32 %v248_v34, %v139_v7 }
  0xa2   :  { %500 = vmatmul.f32.gmra.mxu0 %v189_v41 }
  0xa3   :  { %557 = vmatmul.f32.gmra.mxu1 %v181_v32  ;;  %v316_v31 = vadd.f32 %v315_v9, %v249_v25 }
  0xa5   :  { %v389_v37 = vadd.f32 %v388_v13, %v316_v31 }
  0xa6   :  { %v394_v22 = vpop.f32.mrf.mxu3 }
  0xa7   :  { %v155_v54 = vpop.f32.mrf.mxu0 }
  0xa8   :  { %v252_v55 = vpop.f32.mrf.mxu1  ;;  %v320_v17 = vpop.f32.mrf.mxu2 }
  0xa9   :  { %v253_v20 = vadd.f32 %v252_v55, %v147_v14  ;;  %v605_v14 = vsub.f32 %v1925_v1, %v1930_v46 }
  0xaa   :  { %504 = vmatmul.f32.gmra.mxu0 %v197_v47 }
  0xab   :  { %561 = vmatmul.f32.gmra.mxu1 %v189_v41  ;;  %v321_v50 = vadd.f32 %v320_v17, %v253_v20 }
  0xad   :  { %v395_v55 = vadd.f32 %v394_v22, %v321_v50 }
  0xae   :  { %v400_v40 = vpop.f32.mrf.mxu3 }
  0xaf   :  { %v1898_v56 = vpop.f32.mrf.mxu0 }
  0xb0   :  { %v256_v57 = vpop.f32.mrf.mxu1  ;;  %v325_v33 = vpop.f32.mrf.mxu2 }
  0xb1   :  { %v257_v51 = vadd.f32 %v256_v57, %v155_v54  ;;  %v1935_v57 = vand.u32 4294901760, %v605_v14 }
  0xb3   :  { %565 = vmatmul.f32.gmra.mxu1 %v197_v47 }
  0xb7   :  { %v1900_v58 = vpop.f32.mrf.mxu0 }
  0xb8   :  { %v1902_v59 = vpop.f32.mrf.mxu1  ;;  %v330_v49 = vpop.f32.mrf.mxu2 }
  0xb9   :  { %v261_v22 = vadd.f32 %v1902_v59, %v1898_v56 }
  0xbf   :  { %v179_v60 = vpop.f32.mrf.mxu0 }
  0xc0   :  { %v1904_v61 = vpop.f32.mrf.mxu1 }
  0xc1   :  { %v265_v25 = vadd.f32 %v1904_v61, %v1900_v58 }
  0xc7   :  { %v187_v62 = vpop.f32.mrf.mxu0 }
  0xc8   :  { %v268_v63 = vpop.f32.mrf.mxu1 }
  0xc9   :  { %v1906_v0 = vadd.f32 %v268_v63, %v179_v60  ;;  %v406_v60 = vpop.f32.mrf.mxu3  ;;  %v326_v63 = vadd.f32 %v325_v33, %v257_v51 }
  0xcf   :  { %v195_v4 = vpop.f32.mrf.mxu0 }
  0xd0   :  { %v272_v6 = vpop.f32.mrf.mxu1 }
  0xd1   :  { %v1908_v8 = vadd.f32 %v272_v6, %v187_v62  ;;  %v401_v6 = vadd.f32 %v400_v40, %v326_v63  ;;  %v412_v19 = vpop.f32.mrf.mxu3 }
  0xd7   :  { %v203_v10 = vpop.f32.mrf.mxu0 }
  0xd8   :  { %v276_v11 = vpop.f32.mrf.mxu1 }
  0xd9   :  { %v1910_v12 = vadd.f32 %v276_v11, %v195_v4  ;;  %v335_v11 = vpop.f32.mrf.mxu2 }
  0xda   :  { %v336_v58 = vadd.f32 %v335_v11, %v265_v25 }
  0xdf   :  { %v469_v16 = vpop.f32.mrf.mxu0 }
  0xe0   :  { %v280_v18 = vpop.f32.mrf.mxu1  ;;  %v470_v27 = vadd.f32 %v469_v16, %v383_v24 }
  0xe1   :  { %v1912_v21 = vadd.f32 %v280_v18, %v203_v10  ;;  %v340_v56 = vpop.f32.mrf.mxu2 }
  0xe7   :  { %v473_v28 = vpop.f32.mrf.mxu0 }
  0xe8   :  { %v530_v29 = vpop.f32.mrf.mxu1  ;;  %v474_v41 = vadd.f32 %v473_v28, %v389_v37  ;;  %v331_v28 = vadd.f32 %v330_v49, %v261_v22  ;;  %v418_v37 = vpop.f32.mrf.mxu3 }
  0xe9   :  { %v531_v32 = vadd.f32 %v530_v29, %v470_v27  ;;  %v345_v49 = vpop.f32.mrf.mxu2 }
  0xea   :  { %v346_v14 = vadd.f32 %v345_v49, %v1908_v8 }
  0xeb   :  { %v592_v38 = vand.u32 4294901760, %v531_v32 }
  0xed   :  { %v632_v45 = vsub.f32 %v531_v32, %v592_v38  ;;  %v407_v32 = vadd.f32 %v406_v60, %v331_v28 }
  0xef   :  { %v477_v42 = vpop.f32.mrf.mxu0  ;;  %v633_v7 = vand.u32 4294901760, %v632_v45 }
  0xf0   :  { %v534_v43 = vpop.f32.mrf.mxu1  ;;  %v478_v5 = vadd.f32 %v477_v42, %v395_v55 }
  0xf1   :  { %v535_v47 = vadd.f32 %v534_v43, %v474_v41  ;;  %v634_v4 = vsub.f32 %v632_v45, %v633_v7  ;;  %v350_v63 = vpop.f32.mrf.mxu2 }
  0xf3   :  { %v590_v48 = vand.u32 4294901760, %v535_v47  ;;  %v635_v10 = vand.u32 4294901760, %v634_v4 }
  0xf5   :  { %v626_v52 = vsub.f32 %v535_v47, %v590_v48  ;;  %591 = vmatpush.msrb.mxu2 %v590_v48 }
  0xf7   :  { %v627_v53 = vand.u32 4294901760, %v626_v52  ;;  %v481_v34 = vpop.f32.mrf.mxu0  ;;  %593 = vmatpush.msrb.mxu2 %v592_v38 }
  0xf8   :  { %v538_v62 = vpop.f32.mrf.mxu1  ;;  %599 = vmatmul.f32.vlgmr.msrb.gmra.mxu2 %v1927_v2  ;;  %v482_v13 = vadd.f32 %v481_v34, %v401_v6 }
  0xf9   :  { %662 = vmatpush.msra.mxu2 %v626_v52  ;;  %v628_v3 = vsub.f32 %v626_v52, %v627_v53  ;;  %v539_v9 = vadd.f32 %v538_v62, %v478_v5 }
  0xfb   :  { %665 = vmatpush.msra.mxu2 %v632_v45  ;;  %v629_v54 = vand.u32 4294901760, %v628_v3  ;;  %v1940_v17 = vand.u32 4294901760, %v539_v9  ;;  %v341_v45 = vadd.f32 %v340_v56, %v1906_v0  ;;  %v424_v0 = vpop.f32.mrf.mxu3 }
  0xfc   :  { %v425_v3 = vadd.f32 %v424_v0, %v346_v14 }
  0xfd   :  { %725 = vmatpush.msrb.mxu2 %v627_v53  ;;  %630 = vmatpush.msrb.mxu3 %v629_v54  ;;  %v822_v26 = vsub.f32 %v539_v9, %v1940_v17  ;;  %v419_v52 = vadd.f32 %v418_v37, %v341_v45 }
  0xff   :  { %729 = vmatpush.msrb.mxu2 %v633_v7  ;;  %v485_v15 = vpop.f32.mrf.mxu0  ;;  %636 = vmatpush.msrb.mxu3 %v635_v10  ;;  %v823_v61 = vand.u32 4294901760, %v822_v26 }
 0x100   :  { %v542_v16 = vpop.f32.mrf.mxu1  ;;  %607 = vmatmul.f32.gmra.mxu2 %v1935_v57  ;;  %1627 = vmatmul.msk.f32.vlgmr.msrb.gmra.mxu3 %vm569_vm5, %v1753_v23  ;;  %v486_v39 = vadd.f32 %v485_v15, %v407_v32 }
 0x101   :  { %v543_v18 = vadd.f32 %v542_v16, %v482_v13  ;;  %692 = vmatpush.msra.mxu3 %v590_v48  ;;  %v824_v40 = vsub.f32 %v822_v26, %v823_v61  ;;  %v355_v16 = vpop.f32.mrf.mxu2 }
 0x103   :  { %v1944_v24 = vand.u32 4294901760, %v543_v18  ;;  %694 = vmatpush.msra.mxu3 %v592_v38  ;;  %v430_v54 = vpop.f32.mrf.mxu3 }
 0x105   :  { %754 = vmatpush.msrb.mxu3 %v590_v48  ;;  %v816_v27 = vsub.f32 %v543_v18, %v1944_v24  ;;  %944 = vmatpush.msra.mxu1 %v1944_v24  ;;  %v825_v48 = vand.u32 4294901760, %v824_v40  ;;  %v351_v18 = vadd.f32 %v350_v63, %v1910_v12 }
 0x107   :  { %756 = vmatpush.msrb.mxu3 %v592_v38  ;;  %v817_v29 = vand.u32 4294901760, %v816_v27  ;;  %v489_v31 = vpop.f32.mrf.mxu0  ;;  %946 = vmatpush.msra.mxu1 %v1940_v17  ;;  %v413_v38 = vadd.f32 %v412_v19, %v336_v58  ;;  %v431_v28 = vadd.f32 %v430_v54, %v351_v18 }
 0x108   :  { %v546_v59 = vpop.f32.mrf.mxu1  ;;  %1628 = vmatmul.msk.f32.gmra.mxu3 %vm569_vm5, %v1792_v35  ;;  %668 = vmatmul.f32.vlgmr.msra.gmra.mxu2 %v1916_v30 }
 0x109   :  { %781 = vmatpush.msra.mxu2 %v1944_v24  ;;  %915 = vmatpush.msra.mxu0 %v817_v29  ;;  %v818_v33 = vsub.f32 %v816_v27, %v817_v29  ;;  %v490_v41 = vadd.f32 %v489_v31, %v413_v38  ;;  %v547_v42 = vadd.f32 %v546_v59, %v486_v39 }
 0x10a   :  { %1637 = vmatmul.msk.f32.vlgmr.msra.gmra.mxu1 %vm569_vm5, %v1753_v23 }
 0x10b   :  { %783 = vmatpush.msra.mxu2 %v1940_v17  ;;  %919 = vmatpush.msra.mxu0 %v823_v61  ;;  %v819_v44 = vand.u32 4294901760, %v818_v33  ;;  %v1966_v50 = vand.u32 4294901760, %v547_v42 }
 0x10c   :  { %1635 = vmatmul.msk.f32.vlgmr.msra.gmra.mxu0 %vm569_vm5, %v1753_v23 }
 0x10d   :  { %v1977_v53 = vsub.f32 %v547_v42, %v1966_v50 }
 0x10f   :  { %v493_v43 = vpop.f32.mrf.mxu0 }
 0x110   :  { %v550_v20 = vpop.f32.mrf.mxu1  ;;  %673 = vmatmul.f32.gmra.mxu2 %v1925_v1  ;;  %698 = vmatmul.f32.vlgmr.msra.gmra.mxu3 %v1919_v36  ;;  %v494_v34 = vadd.f32 %v493_v43, %v419_v52 }
 0x111   :  { %v551_v47 = vadd.f32 %v550_v20, %v490_v41  ;;  %820 = vmatpush.msra.mxu3 %v819_v44 }
 0x112   :  { %1638 = vmatmul.msk.f32.gmra.mxu1 %vm569_vm5, %v1792_v35 }
 0x113   :  { %v1968_v51 = vand.u32 4294901760, %v551_v47  ;;  %826 = vmatpush.msra.mxu3 %v825_v48 }
 0x114   :  { %1636 = vmatmul.msk.f32.gmra.mxu0 %vm569_vm5, %v1792_v35 }
 0x115   :  { %v1973_v7 = vsub.f32 %v551_v47, %v1968_v51  ;;  %1076 = vmatpush.msrb.mxu1 %v1968_v51 }
 0x117   :  { %1046 = vmatpush.msrb.mxu0 %v1973_v7  ;;  %1078 = vmatpush.msrb.mxu1 %v1966_v50  ;;  %v497_v60 = vpop.f32.mrf.mxu0  ;;  %v1011_v19 = vand.u32 4294901760, %v1973_v7 }
 0x118   :  { %v554_v62 = vpop.f32.mrf.mxu1  ;;  %704 = vmatmul.f32.gmra.mxu3 %v1930_v46  ;;  %1629 = vmatmul.msk.f32.vlgmr.msrb.gmra.mxu2 %vm569_vm5, %v1753_v23  ;;  %v498_v5 = vadd.f32 %v497_v60, %v425_v3 }
 0x119   :  { %v555_v55 = vadd.f32 %v554_v62, %v494_v34  ;;  %852 = vmatpush.msrb.mxu2 %v816_v27  ;;  %1049 = vmatpush.msrb.mxu0 %v1977_v53  ;;  %v436_v27 = vpop.f32.mrf.mxu3  ;;  %v1012_v29 = vsub.f32 %v1973_v7, %v1011_v19 }
 0x11a   :  { %1082 = vmatmul.f32.vlgmr.msrb.gmra.mxu1 %v1919_v36 }
 0x11b   :  { %855 = vmatpush.msrb.mxu2 %v822_v26  ;;  %v1988_v4 = vand.u32 4294901760, %v555_v55  ;;  %v1017_v26 = vand.u32 4294901760, %v1977_v53  ;;  %v1013_v37 = vand.u32 4294901760, %v1012_v29 }
 0x11c   :  { %1052 = vmatmul.f32.vlgmr.msrb.gmra.mxu0 %v1916_v30 }
 0x11d   :  { %v1995_v8 = vsub.f32 %v555_v55, %v1988_v4  ;;  %v1018_v61 = vsub.f32 %v1977_v53, %v1017_v26 }
 0x11f   :  { %v501_v10 = vpop.f32.mrf.mxu0  ;;  %v1219_v15 = vand.u32 4294901760, %v1995_v8  ;;  %v1019_v40 = vand.u32 4294901760, %v1018_v61 }
 0x120   :  { %v558_v6 = vpop.f32.mrf.mxu1  ;;  %1630 = vmatmul.msk.f32.gmra.mxu2 %vm569_vm5, %v1792_v35  ;;  %1631 = vmatmul.msk.f32.vlgmr.msrb.gmra.mxu3 %vm569_vm5, %v1753_v23  ;;  %v502_v59 = vadd.f32 %v501_v10, %v431_v28 }
 0x121   :  { %v559_v9 = vadd.f32 %v558_v6, %v498_v5  ;;  %882 = vmatpush.msrb.mxu3 %v1944_v24  ;;  %v1220_v12 = vsub.f32 %v1995_v8, %v1219_v15 }
 0x122   :  { %1088 = vmatmul.f32.gmra.mxu1 %v1930_v46 }
 0x123   :  { %v1999_v11 = vand.u32 4294901760, %v559_v9  ;;  %884 = vmatpush.msrb.mxu3 %v1940_v17  ;;  %v356_v17 = vadd.f32 %v355_v16, %v1912_v21  ;;  %v1221_v58 = vand.u32 4294901760, %v1220_v12 }
 0x124   :  { %1057 = vmatmul.f32.gmra.mxu0 %v1925_v1 }
 0x125   :  { %v2004_v13 = vsub.f32 %v559_v9, %v1999_v11  ;;  %1177 = vmatpush.msra.mxu0 %v1999_v11  ;;  %v437_v21 = vadd.f32 %v436_v27, %v356_v17 }
 0x127   :  { %v1213_v22 = vand.u32 4294901760, %v2004_v13  ;;  %1179 = vmatpush.msra.mxu0 %v1988_v4  ;;  %v505_v56 = vpop.f32.mrf.mxu0 }
 0x128   :  { %v562_v24 = vpop.f32.mrf.mxu1  ;;  %1632 = vmatmul.msk.f32.gmra.mxu3 %vm569_vm5, %v1792_v35  ;;  %789 = vmatmul.f32.vlgmr.msra.gmra.mxu2 %v1927_v2  ;;  %v506_v32 = vadd.f32 %v505_v56, %v437_v21 }
 0x129   :  { %v1214_v25 = vsub.f32 %v2004_v13, %v1213_v22  ;;  %975 = vmatpush.msra.mxu2 %v1968_v51  ;;  %1311 = vmatpush.msrb.mxu0 %v1213_v22  ;;  %v563_v33 = vadd.f32 %v562_v24, %v502_v59 }
 0x12b   :  { %977 = vmatpush.msra.mxu2 %v1966_v50  ;;  %1315 = vmatpush.msrb.mxu0 %v1219_v15  ;;  %v1215_v31 = vand.u32 4294901760, %v1214_v25  ;;  %v1380_v41 = vand.u32 4294901760, %v563_v33 }
 0x12c   :  { %1185 = vmatmul.f32.vlgmr.msra.gmra.mxu0 %v1927_v2 }
 0x12d   :  { %1216 = vmatpush.msra.mxu1 %v1215_v31  ;;  %v1420_v44 = vsub.f32 %v563_v33, %v1380_v41 }
 0x12f   :  { %1222 = vmatpush.msra.mxu1 %v1221_v58  ;;  %v1421_v45 = vand.u32 4294901760, %v1420_v44 }
 0x130   :  { %v566_v38 = vpop.f32.mrf.mxu1  ;;  %797 = vmatmul.f32.gmra.mxu2 %v1935_v57  ;;  %1633 = vmatmul.msk.f32.vlgmr.msra.gmra.mxu3 %vm569_vm5, %v1753_v23 }
 0x131   :  { %v567_v39 = vadd.f32 %v566_v38, %v506_v32  ;;  %1014 = vmatpush.msra.mxu3 %v1013_v37  ;;  %1340 = vmatpush.msrb.mxu1 %v1999_v11  ;;  %v1422_v48 = vsub.f32 %v1420_v44, %v1421_v45 }
 0x132   :  { %1645 = vmatmul.msk.f32.vlgmr.msra.gmra.mxu1 %vm569_vm5, %v1753_v23 }
 0x133   :  { %v1378_v42 = vand.u32 4294901760, %v567_v39  ;;  %1020 = vmatpush.msra.mxu3 %v1019_v40  ;;  %1342 = vmatpush.msrb.mxu1 %v1988_v4 }
 0x134   :  { %1193 = vmatmul.f32.gmra.mxu0 %v1935_v57 }
 0x135   :  { %v1414_v43 = vsub.f32 %v567_v39, %v1378_v42  ;;  %1480 = vmatpush.msra.mxu1 %v1378_v42 }
 0x137   :  { %1450 = vmatpush.msra.mxu0 %v1414_v43  ;;  %1482 = vmatpush.msra.mxu1 %v1380_v41  ;;  %v1415_v20 = vand.u32 4294901760, %v1414_v43 }
 0x138   :  { %1634 = vmatmul.msk.f32.gmra.mxu3 %vm569_vm5, %v1792_v35  ;;  %858 = vmatmul.f32.vlgmr.msrb.gmra.mxu2 %v1916_v30 }
 0x139   :  { %1109 = vmatpush.msrb.mxu2 %v1011_v19  ;;  %1453 = vmatpush.msra.mxu0 %v1420_v44  ;;  %v1416_v47 = vsub.f32 %v1414_v43, %v1415_v20 }
 0x13a   :  { %1646 = vmatmul.msk.f32.gmra.mxu1 %vm569_vm5, %v1792_v35 }
 0x13b   :  { %1113 = vmatpush.msrb.mxu2 %v1017_v26  ;;  %v1417_v49 = vand.u32 4294901760, %v1416_v47 }
 0x13c   :  { %1647 = vmatmul.msk.f32.vlgmr.msrb.gmra.mxu0 %vm569_vm5, %v1753_v23 }
 0x140   :  { %863 = vmatmul.f32.gmra.mxu2 %v1925_v1  ;;  %888 = vmatmul.f32.vlgmr.msrb.gmra.mxu3 %v1919_v36 }
 0x141   :  { %1138 = vmatpush.msrb.mxu3 %v1968_v51 }
 0x142   :  { %1649 = vmatmul.msk.f32.vlgmr.msrb.gmra.mxu1 %vm569_vm5, %v1753_v23 }
 0x143   :  { %1140 = vmatpush.msrb.mxu3 %v1966_v50  ;;  %v1423_v50 = vand.u32 4294901760, %v1422_v48 }
 0x144   :  { %1648 = vmatmul.msk.f32.gmra.mxu0 %vm569_vm5, %v1792_v35 }
 0x148   :  { %894 = vmatmul.f32.gmra.mxu3 %v1930_v46  ;;  %983 = vmatmul.f32.vlgmr.msra.gmra.mxu2 %v1927_v2 }
 0x149   :  { %1248 = vmatpush.msra.mxu2 %v2004_v13 }
 0x14a   :  { %1650 = vmatmul.msk.f32.gmra.mxu1 %vm569_vm5, %v1792_v35 }
 0x14b   :  { %1251 = vmatpush.msra.mxu2 %v1995_v8 }
 0x14c   :  { %1456 = vmatmul.f32.vlgmr.msra.gmra.mxu0 %v1916_v30 }
 0x150   :  { %991 = vmatmul.f32.gmra.mxu2 %v1935_v57  ;;  %1639 = vmatmul.msk.f32.vlgmr.msra.gmra.mxu3 %vm569_vm5, %v1753_v23 }
 0x151   :  { %1278 = vmatpush.msra.mxu3 %v1999_v11 }
 0x152   :  { %1486 = vmatmul.f32.vlgmr.msra.gmra.mxu1 %v1919_v36 }
 0x153   :  { %1280 = vmatpush.msra.mxu3 %v1988_v4 }
 0x154   :  { %1461 = vmatmul.f32.gmra.mxu0 %v1925_v1 }
 0x158   :  { %1640 = vmatmul.msk.f32.gmra.mxu3 %vm569_vm5, %v1792_v35  ;;  %1641 = vmatmul.msk.f32.vlgmr.msrb.gmra.mxu2 %vm569_vm5, %v1753_v23 }
 0x159   :  { %1379 = vmatpush.msrb.mxu2 %v1378_v42 }
 0x15a   :  { %1492 = vmatmul.f32.gmra.mxu1 %v1930_v46 }
 0x15b   :  { %1381 = vmatpush.msrb.mxu2 %v1380_v41 }
 0x160   :  { %1642 = vmatmul.msk.f32.gmra.mxu2 %vm569_vm5, %v1792_v35  ;;  %1643 = vmatmul.msk.f32.vlgmr.msrb.gmra.mxu3 %vm569_vm5, %v1753_v23 }
 0x161   :  { %1418 = vmatpush.msrb.mxu3 %v1417_v49 }
 0x163   :  { %1424 = vmatpush.msrb.mxu3 %v1423_v50 }
 0x168   :  { %1644 = vmatmul.msk.f32.gmra.mxu3 %vm569_vm5, %v1792_v35  ;;  %1254 = vmatmul.f32.vlgmr.msra.gmra.mxu2 %v1916_v30 }
 0x169   :  { %1513 = vmatpush.msra.mxu2 %v1415_v20 }
 0x16b   :  { %1517 = vmatpush.msra.mxu2 %v1421_v45 }
 0x170   :  { %1284 = vmatmul.f32.vlgmr.msra.gmra.mxu3 %v1919_v36  ;;  %1259 = vmatmul.f32.gmra.mxu2 %v1925_v1 }
 0x171   :  { %1542 = vmatpush.msra.mxu3 %v1378_v42 }
 0x173   :  { %1544 = vmatpush.msra.mxu3 %v1380_v41 }
 0x178   :  { %1290 = vmatmul.f32.gmra.mxu3 %v1930_v46  ;;  %1387 = vmatmul.f32.vlgmr.msrb.gmra.mxu2 %v1927_v2 }
 0x17b   :  { %v600_v51 = vpop.f32.mrf.mxu2 }
 0x180   :  { %1651 = vmatmul.msk.f32.vlgmr.msrb.gmra.mxu3 %vm569_vm5, %v1753_v23  ;;  %1395 = vmatmul.f32.gmra.mxu2 %v1935_v57 }
 0x183   :  { %v639_v52 = vpop.f32.mrf.mxu3  ;;  %v608_v30 = vpop.f32.mrf.mxu2 }
 0x184   :  { %v640_v7 = vadd.f32 %v639_v52, %v600_v51 }
 0x187   :  { %v949_v13 = vpop.f32.mrf.mxu1 }
 0x188   :  { %1652 = vmatmul.msk.f32.gmra.mxu3 %vm569_vm5, %v1792_v35  ;;  %1653 = vmatmul.msk.f32.vlgmr.msra.gmra.mxu2 %vm569_vm5, %v1753_v23 }
 0x189   :  { %v922_v11 = vpop.f32.mrf.mxu0 }
 0x18b   :  { %v643_v36 = vpop.f32.mrf.mxu3  ;;  %v669_v1 = vpop.f32.mrf.mxu2 }
 0x18c   :  { %v644_v46 = vadd.f32 %v643_v36, %v608_v30  ;;  %v670_v0 = vadd.f32 %v669_v1, %v640_v7 }
 0x18f   :  { %v953_v22 = vpop.f32.mrf.mxu1 }
 0x190   :  { %1655 = vmatmul.msk.f32.vlgmr.msra.gmra.mxu3 %vm569_vm5, %v1753_v23  ;;  %1654 = vmatmul.msk.f32.gmra.mxu2 %vm569_vm5, %v1792_v35 }
 0x191   :  { %v926_v19 = vpop.f32.mrf.mxu0 }
 0x193   :  { %v699_v2 = vpop.f32.mrf.mxu3  ;;  %v674_v57 = vpop.f32.mrf.mxu2 }
 0x194   :  { %v700_v53 = vadd.f32 %v699_v2, %v670_v0  ;;  %v675_v34 = vadd.f32 %v674_v57, %v644_v46 }
 0x197   :  { %v1083_v21 = vpop.f32.mrf.mxu1 }
 0x198   :  { %1656 = vmatmul.msk.f32.gmra.mxu3 %vm569_vm5, %v1792_v35 }
 0x199   :  { %v1053_v28 = vpop.f32.mrf.mxu0 }
 0x19b   :  { %v705_v60 = vpop.f32.mrf.mxu3  ;;  %v732_v62 = vpop.f32.mrf.mxu2 }
 0x19c   :  { %v706_v14 = vadd.f32 %v705_v60, %v675_v34  ;;  %v733_v55 = vadd.f32 %v732_v62, %v700_v53 }
 0x19f   :  { %v1089_v20 = vpop.f32.mrf.mxu1 }
 0x1a1   :  { %v1058_v42 = vpop.f32.mrf.mxu0 }
 0x1a3   :  { %v759_v63 = vpop.f32.mrf.mxu3  ;;  %v736_v3 = vpop.f32.mrf.mxu2 }
 0x1a4   :  { %v2090_v4 = vadd.f32 %v759_v63, %v733_v55  ;;  %v737_v5 = vadd.f32 %v736_v3, %v706_v14 }
 0x1a6   :  { %v956_v26 = vmul.f32 0.012345679, %v2090_v4 }
 0x1a8   :  { %v1150_v14 = vmul.f32 2.0, %v956_v26 }
 0x1a9   :  { %v1186_v50 = vpop.f32.mrf.mxu0 }
 0x1ab   :  { %v763_v23 = vpop.f32.mrf.mxu3  ;;  %v790_v54 = vpop.f32.mrf.mxu2 }
 0x1ac   :  { %v2092_v6 = vadd.f32 %v763_v23, %v737_v5 }
 0x1ae   :  { %v957_v38 = vmul.f32 0.012345679, %v2092_v6 }
 0x1af   :  { %v1225_v51 = vpop.f32.mrf.mxu1 }
 0x1b0   :  { %v1226_v57 = vadd.f32 %v1225_v51, %v1186_v50 }
 0x1b1   :  { %v1194_v7 = vpop.f32.mrf.mxu0 }
 0x1b3   :  { %v829_v8 = vpop.f32.mrf.mxu3  ;;  %v798_v9 = vpop.f32.mrf.mxu2 }
 0x1b4   :  { %v830_v10 = vadd.f32 %v829_v8, %v790_v54 }
 0x1b7   :  { %v1229_v1 = vpop.f32.mrf.mxu1 }
 0x1b9   :  { %v1318_v60 = vpop.f32.mrf.mxu0 }
 0x1bb   :  { %v833_v15 = vpop.f32.mrf.mxu3  ;;  %v859_v35 = vpop.f32.mrf.mxu2 }
 0x1bc   :  { %v834_v16 = vadd.f32 %v833_v15, %v798_v9  ;;  %v860_v18 = vadd.f32 %v859_v35, %v830_v10  ;;  %v1156_v10 = vmul.f32 %v956_v26, %v956_v26 }
 0x1bf   :  { %v1345_v63 = vpop.f32.mrf.mxu1 }
 0x1c3   :  { %v889_v24 = vpop.f32.mrf.mxu3  ;;  %v864_v17 = vpop.f32.mrf.mxu2 }
 0x1c4   :  { %v890_v25 = vadd.f32 %v889_v24, %v860_v18  ;;  %v865_v56 = vadd.f32 %v864_v17, %v834_v16  ;;  %v1158_v24 = vmul.f32 81.0, %v1156_v10  ;;  %v1151_v17 = vmul.f32 2.0, %v957_v38 }
 0x1c6   :  { %v923_v12 = vadd.f32 %v922_v11, %v890_v25  ;;  %v1152_v11 = vmul.f32 %v1150_v14, %v2090_v4 }
 0x1c8   :  { %v950_v27 = vadd.f32 %v949_v13, %v923_v12  ;;  %v1230_v13 = vadd.f32 %v1229_v1, %v1194_v7 }
 0x1ca   :  { %v958_v29 = vmul.f32 0.012345679, %v950_v27  ;;  %v2095_v31 = vmul.f32 %v956_v26, %v950_v27 }
 0x1cb   :  { %v895_v59 = vpop.f32.mrf.mxu3  ;;  %v984_v58 = vpop.f32.mrf.mxu2 }
 0x1cc   :  { %v896_v61 = vadd.f32 %v895_v59, %v865_v56  ;;  %v2098_v32 = vmul.f32 %v958_v29, %v2090_v4  ;;  %v2100_v33 = vmul.f32 %v958_v29, %v956_v26  ;;  %v1352_v9 = vmul.f32 2.0, %v958_v29 }
 0x1cd   :  { %v1358_v35 = vmul.f32 %v958_v29, %v958_v29  ;;  %v1349_v29 = vpop.f32.mrf.mxu1 }
 0x1ce   :  { %v927_v37 = vadd.f32 %v926_v19, %v896_v61 }
 0x1d0   :  { %v2103_v39 = vadd.f32 %v953_v22, %v927_v37  ;;  %v1354_v22 = vmul.f32 %v1352_v9, %v950_v27 }
 0x1d2   :  { %v959_v40 = vmul.f32 0.012345679, %v2103_v39  ;;  %v2107_v41 = vmul.f32 %v957_v38, %v2103_v39 }
 0x1d3   :  { %v1023_v43 = vpop.f32.mrf.mxu3  ;;  %v992_v44 = vpop.f32.mrf.mxu2 }
 0x1d4   :  { %v2110_v45 = vmul.f32 %v959_v40, %v2092_v6  ;;  %v2112_v47 = vmul.f32 %v959_v40, %v957_v38  ;;  %v1024_v36 = vadd.f32 %v1023_v43, %v984_v58  ;;  %v1353_v58 = vmul.f32 2.0, %v959_v40 }
 0x1d5   :  { %v1157_v43 = vmul.f32 %v957_v38, %v957_v38 }
 0x1d6   :  { %v1054_v2 = vadd.f32 %v1053_v28, %v1024_v36  ;;  %v1360_v28 = vmul.f32 81.0, %v1358_v35  ;;  %v1355_v51 = vmul.f32 %v1353_v58, %v2103_v39 }
 0x1d8   :  { %v1084_v53 = vadd.f32 %v1083_v21, %v1054_v2  ;;  %v1322_v21 = vpop.f32.mrf.mxu0 }
 0x1db   :  { %v1027_v48 = vpop.f32.mrf.mxu3  ;;  %v1116_v49 = vpop.f32.mrf.mxu2 }
 0x1dc   :  { %v1028_v34 = vadd.f32 %v1027_v48, %v992_v44  ;;  %v1117_v62 = vadd.f32 %v1116_v49, %v1084_v53  ;;  %v1153_v44 = vmul.f32 %v1151_v17, %v2092_v6  ;;  %v1359_v48 = vmul.f32 %v959_v40, %v959_v40 }
 0x1de   :  { %v1059_v23 = vadd.f32 %v1058_v42, %v1028_v34  ;;  %v1361_v7 = vmul.f32 81.0, %v1359_v48  ;;  %v1487_v34 = vpop.f32.mrf.mxu1 }
 0x1e0   :  { %v1090_v16 = vadd.f32 %v1089_v20, %v1059_v23 }
 0x1e3   :  { %v1143_v52 = vpop.f32.mrf.mxu3  ;;  %v1120_v30 = vpop.f32.mrf.mxu2 }
 0x1e4   :  { %v1144_v54 = vadd.f32 %v1143_v52, %v1117_v62  ;;  %v1121_v25 = vadd.f32 %v1120_v30, %v1090_v16  ;;  %v1159_v52 = vmul.f32 81.0, %v1157_v43 }
 0x1e6   :  { %v1154_v18 = vsub.f32 %v1144_v54, %v1152_v11  ;;  %v1493_v23 = vpop.f32.mrf.mxu1  ;;  %v1564_v11 = vmul.f32 81.0, %v2100_v33 }
 0x1e8   :  { %v1160_v26 = vadd.f32 %v1158_v24, %v1154_v18 }
 0x1eb   :  { %v1147_v46 = vpop.f32.mrf.mxu3  ;;  %v1255_v0 = vpop.f32.mrf.mxu2 }
 0x1ec   :  { %v1256_v55 = vadd.f32 %v1255_v0, %v1226_v57  ;;  %v1148_v37 = vadd.f32 %v1147_v46, %v1121_v25  ;;  %v1457_v57 = vpop.f32.mrf.mxu0  ;;  %v1565_v25 = vmul.f32 81.0, %v2112_v47 }
 0x1ee   :  { %v1155_v49 = vsub.f32 %v1148_v37, %v1153_v44 }
 0x1f0   :  { %v1161_v0 = vadd.f32 %v1159_v52, %v1155_v49 }
 0x1f3   :  { %v1285_v3 = vpop.f32.mrf.mxu3  ;;  %v1260_v5 = vpop.f32.mrf.mxu2 }
 0x1f4   :  { %v1286_v8 = vadd.f32 %v1285_v3, %v1256_v55  ;;  %v1261_v56 = vadd.f32 %v1260_v5, %v1230_v13  ;;  %v1462_v14 = vpop.f32.mrf.mxu0 }
 0x1f6   :  { %v1319_v15 = vadd.f32 %v1318_v60, %v1286_v8 }
 0x1f8   :  { %v1346_v19 = vadd.f32 %v1345_v63, %v1319_v15 }
 0x1fa   :  { %v1356_v12 = vsub.f32 %v1346_v19, %v1354_v22 }
 0x1fb   :  { %v1291_v59 = vpop.f32.mrf.mxu3  ;;  %v1388_v61 = vpop.f32.mrf.mxu2 }
 0x1fc   :  { %v1362_v4 = vadd.f32 %v1360_v28, %v1356_v12  ;;  %v1292_v42 = vadd.f32 %v1291_v59, %v1261_v56 }
 0x1fe   :  { %v1570_v20 = vmul.f32 %v1362_v4, %v1160_v26  ;;  %v1323_v27 = vadd.f32 %v1322_v21, %v1292_v42 }
 0x200   :  { %v1350_v50 = vadd.f32 %v1349_v29, %v1323_v27  ;;  %v1572_v63 = vadd.f32 1e-05, %v1570_v20 }
 0x202   :  { %v1357_v30 = vsub.f32 %v1350_v50, %v1355_v51  ;;  %1663 = vrcp.f32 %v1572_v63 }
 0x203   :  { %v1427_v36 = vpop.f32.mrf.mxu3  ;;  %v1396_v1 = vpop.f32.mrf.mxu2 }
 0x204   :  { %v1363_v46 = vadd.f32 %v1361_v7, %v1357_v30  ;;  %v1428_v38 = vadd.f32 %v1427_v36, %v1388_v61 }
 0x206   :  { %v1571_v2 = vmul.f32 %v1363_v46, %v1161_v0  ;;  %v1458_v6 = vadd.f32 %v1457_v57, %v1428_v38 }
 0x208   :  { %v1488_v40 = vadd.f32 %v1487_v34, %v1458_v6  ;;  %v1573_v35 = vadd.f32 1e-05, %v1571_v2  ;;  %v1664_v22 = vpop.eup %1663 }
 0x20a   :  { %1665 = vrcp.f32 %v1573_v35 }
 0x20b   :  { %v1431_v53 = vpop.f32.mrf.mxu3  ;;  %v1520_v60 = vpop.f32.mrf.mxu2 }
 0x20c   :  { %v1432_v62 = vadd.f32 %v1431_v53, %v1396_v1  ;;  %v1521_v55 = vadd.f32 %v1520_v60, %v1488_v40 }
 0x20e   :  { %v1463_v5 = vadd.f32 %v1462_v14, %v1432_v62 }
 0x210   :  { %v1494_v10 = vadd.f32 %v1493_v23, %v1463_v5  ;;  %v1666_v28 = vpop.eup %1665 }
 0x213   :  { %v1547_v39 = vpop.f32.mrf.mxu3  ;;  %v1524_v8 = vpop.f32.mrf.mxu2 }
 0x214   :  { %v1548_v3 = vadd.f32 %v1547_v39, %v1521_v55  ;;  %v1525_v13 = vadd.f32 %v1524_v8, %v1494_v10 }
 0x216   :  { %v1556_v54 = vsub.f32 %v1548_v3, %v2098_v32 }
 0x218   :  { %v1560_v9 = vsub.f32 %v1556_v54, %v2095_v31 }
 0x21a   :  { %v1566_v15 = vadd.f32 %v1564_v11, %v1560_v9 }
 0x21b   :  { %v1551_v16 = vpop.f32.mrf.mxu3 }
 0x21c   :  { %v1552_v18 = vadd.f32 %v1551_v16, %v1525_v13  ;;  %v1568_v19 = vmul.f32 %v1566_v15, %v1566_v15 }
 0x21e   :  { %v1557_v24 = vsub.f32 %v1552_v18, %v2110_v45  ;;  %v1576_v17 = vmul.f32 %v1664_v22, %v1568_v19 }
 0x220   :  { %v1561_v32 = vsub.f32 %v1557_v24, %v2107_v41  ;;  %v1578_v33 = vsel %vm74_vm0, %v1576_v17, 0.0 }
 0x222   :  { %v1567_v12 = vadd.f32 %v1565_v25, %v1561_v32 }
 0x224   :  { %v1569_v31 = vmul.f32 %v1567_v12, %v1567_v12 }
 0x226   :  { %v1577_v56 = vmul.f32 %v1666_v28, %v1569_v31 }
 0x228   :  { %v1579_v21 = vsel %vm74_vm0, %v1577_v56, 0.0 }
 0x229   :  { %v1580_v59 = vadd.f32 %v1579_v21, %v1578_v33 }
 0x22b   :  { %1581 = vadd.xlane.f32.xlu0 %v1580_v59 }
 0x29e   :  { %v1582_v58 = vpop.xlane.xlu0 %1581 }
 0x29f   :  { %v1583_v61 = vrot.slane %v1582_v58, 4 }
 0x2a1   :  { %v1584_v26 = vadd.f32 %v1583_v61, %v1582_v58 }
 0x2a3   :  { %v1585_v45 = vrot.slane %v1584_v26, 2 }
 0x2a5   :  { %v1586_v37 = vadd.f32 %v1585_v45, %v1584_v26 }
 0x2a7   :  { %v1587_v4 = vrot.slane %v1586_v37, 1 }
 0x2a9   :  { %v1588_v42 = vadd.f32 %v1587_v4, %v1586_v37 }
 0x2ab   :  { %1657 = vpush %v1588_v42 }
 0x2dc   :  { %s1658_s20 = spop %1657 }
 0x2dd   :  { %v1590_v41 = vstv %s1658_s20 }
 0x2de   :  { %1592 = vst.msk [vmem:[#allocation2] sm:$0x1] %vm1591_vm8, %v1590_v41 }
 0x2df   :  { %1603 = dma.vmem_to_hbm [thread:$0]  %s1599_s16, 16, %s1601_s19, [#allocation3]  }
 0x2e0   :  { %1691 = dma.done.wait [#allocation3], 16  }
 0x2e1   :  { %1692 = vsyncadd [#allocation3], 4294967280 }
 0x2e2   :  { %1608 = vsyncpa [#allocation3], 1 }

</bundles_post_ra>
